<compile_context>
chip_gen: v6e
topology: v6e:2x2x1
jax: 0.10.0
libtpu: 0.0.40
codegen_flags: <defaults>
</compile_context>

<pallas_src>
import functools

import jax
import jax.numpy as jnp
from jax.experimental import pallas as pl
from jax.experimental.pallas import tpu as pltpu


def _vanishing_act_kernel(x_ref, o_ref, *, alpha, compute_dtype):
    x = x_ref[...].astype(compute_dtype)
    o_ref[...] = (x * jnp.tanh(alpha * x)).astype(o_ref.dtype)


def _vmem_limit_bytes():
    """Scoped-VMEM limit with generation-aware headroom (v7x has 64 MiB physical)."""
    try:
        cap = int(pltpu.get_tpu_info().vmem_capacity_bytes)
    except Exception:
        cap = 128 * 1024 * 1024
    # Half of physical VMEM, capped at 64 MiB: 64 MiB on v5e/v6e, 32 MiB on v7x.
    return min(cap // 2, 64 * 1024 * 1024)


def _compute_dtype(dtype):
    """f32 compute only where needed: native dtype on v6e/v7x (bf16 VPU/EUP)."""
    if dtype == jnp.float32:
        return jnp.float32
    try:
        kind = jax.devices()[0].device_kind.lower()
    except Exception:
        kind = ""
    is_v5e = ("v5 lite" in kind) or ("v5e" in kind) or ("v5litepod" in kind)
    return jnp.float32 if is_v5e else dtype


def _choose_lanes(n):
    """Largest lane width <= 8192 that is a multiple of 128 and divides n exactly.

    Caller guarantees n % 128 == 0, so this always succeeds (worst case 128).
    """
    m = n // 128
    for d in range(min(m, 64), 0, -1):
        if m % d == 0:
            return 128 * d
    return 128


def _pallas_forward_2d(x2d, alpha, compute_dtype, target_block_bytes):
    rows, lanes = x2d.shape
    dtype = x2d.dtype
    itemsize = jnp.dtype(dtype).itemsize
    sub = max(8, 32 // itemsize)          # sublane packing: f32 -> 8, bf16 -> 16, i8 -> 32
    total_bytes = rows * lanes * itemsize
    vmem_limit = _vmem_limit_bytes()

    SMALL_BYTES = 512 * 1024              # single-block only for truly small arrays
    MIN_STEPS = 4                         # keep prefetch/writeback overlapped otherwise

    if total_bytes <= SMALL_BYTES or rows <= sub:
        block_rows = rows                 # block == full array dims (no (8,128) constraint)
    else:
        # ~4 MiB per block; in+out double-buffered -> ~16 MiB residency, fits all gens.
        cap_bytes = min(target_block_bytes, vmem_limit // 8)
        block_rows = max(1, cap_bytes // (lanes * itemsize))
        block_rows = min(block_rows, pl.cdiv(rows, MIN_STEPS))
        block_rows = max(sub, (block_rows // sub) * sub)
        block_rows = min(block_rows, rows)

    grid = (pl.cdiv(rows, block_rows),)

    kernel = functools.partial(
        _vanishing_act_kernel, alpha=float(alpha), compute_dtype=compute_dtype
    )

    return pl.pallas_call(
        kernel,
        out_shape=jax.ShapeDtypeStruct((rows, lanes), dtype),
        grid_spec=pl.GridSpec(
            grid=grid,
            in_specs=[pl.BlockSpec((block_rows, lanes), lambda i: (i, 0))],
            out_specs=pl.BlockSpec((block_rows, lanes), lambda i: (i, 0)),
        ),
        compiler_params=pltpu.CompilerParams(
            dimension_semantics=("parallel",),
            vmem_limit_bytes=int(vmem_limit),
        ),
    )(x2d)


def vanishing_activation(x, alpha=0.25, *, target_block_bytes=4 * 1024 * 1024):
    """Elementwise x * tanh(alpha * x) via a Pallas TPU kernel."""
    orig_shape = x.shape
    n = x.size
    if n == 0:
        return x

    x_flat = x.reshape(-1)
    compute_dtype = _compute_dtype(x.dtype)
    n_main = (n // 128) * 128

    if n_main == 0:
        # Tensor smaller than one lane row: single full-extent block.
        y = _pallas_forward_2d(
            x_flat.reshape(1, n), alpha, compute_dtype, target_block_bytes
        )
        return y.reshape(orig_shape)

    if n_main == n:
        # Exact lane-dense reshape, zero extra HBM traffic.
        lanes = _choose_lanes(n)
        y = _pallas_forward_2d(
            x_flat.reshape(n // lanes, lanes), alpha, compute_dtype, target_block_bytes
        )
        return y.reshape(orig_shape)

    # Ragged size: stream the 128-aligned bulk through the kernel; compute the
    # tiny (< 128 element) tail in plain JAX instead of padding the whole array.
    lanes = _choose_lanes(n_main)
    bulk = x_flat[:n_main].reshape(n_main // lanes, lanes)
    y_bulk = _pallas_forward_2d(bulk, alpha, compute_dtype, target_block_bytes).reshape(-1)
    x_tail = x_flat[n_main:].astype(compute_dtype)
    y_tail = (x_tail * jnp.tanh(alpha * x_tail)).astype(x.dtype)
    return jnp.concatenate([y_bulk, y_tail]).reshape(orig_shape)


if __name__ == "__main__":
    alpha = 0.25
    key = jax.random.PRNGKey(0)

    # Spec-sized input (NCHW, matches the PyTorch module's usage).
    x = jax.random.normal(key, (2, 4, 16, 16), dtype=jnp.float32)
    y = jax.block_until_ready(vanishing_activation(x, alpha=alpha))
    y_ref = x * jnp.tanh(alpha * x)
    assert y.shape == x.shape and y.dtype == x.dtype
    assert jnp.allclose(y, y_ref, atol=1e-6, rtol=1e-6)

    # Ragged size (n % 128 != 0): exercises the bulk + tiny-tail path.
    x2 = jax.random.normal(jax.random.PRNGKey(1), (3, 5, 11), dtype=jnp.float32)
    y2 = jax.block_until_ready(vanishing_activation(x2, alpha=alpha))
    assert jnp.allclose(y2, x2 * jnp.tanh(alpha * x2), atol=1e-6, rtol=1e-6)

    # Larger f32 input: exercises the multi-block pipelined grid (>= 4 steps).
    x3 = jax.random.normal(jax.random.PRNGKey(2), (1024, 1024), dtype=jnp.float32)
    y3 = jax.block_until_ready(vanishing_activation(x3, alpha=alpha))
    assert jnp.allclose(y3, x3 * jnp.tanh(alpha * x3), atol=1e-6, rtol=1e-6)

    # bf16 input: exercises the native-dtype compute path on v6e/v7x.
    x4 = jax.random.normal(jax.random.PRNGKey(3), (256, 384), dtype=jnp.bfloat16)
    y4 = jax.block_until_ready(vanishing_activation(x4, alpha=alpha))
    x4f = x4.astype(jnp.float32)
    ref4 = x4f * jnp.tanh(alpha * x4f)
    assert jnp.allclose(y4.astype(jnp.float32), ref4, atol=5e-2, rtol=5e-2)

    print("KERNEL_OK")
</pallas_src>

<mosaic_0001>
module attributes {stable_mosaic.version = 11 : i64} {
  func.func @_vanishing_act_kernel(%arg0: i32, %arg1: memref<1x2048xf32, #tpu.memory_space<vmem>>, %arg2: memref<1x2048xf32, #tpu.memory_space<vmem>>) attributes {dimension_semantics = [#tpu.dimension_semantics<parallel>], iteration_bounds = array<i64: 1>, scalar_prefetch = 0 : i64, scratch_operands = 0 : i64, tpu.core_type = #tpu.core_type<tc>, window_params = [{transform_indices = @transform_0, window_bounds = array<i64: 1, 2048>}, {transform_indices = @transform_1, window_bounds = array<i64: 1, 2048>}]} {
    %c0 = arith.constant 0 : index
    %c0_0 = arith.constant 0 : index
    %0 = vector.load %arg1[%c0, %c0_0] : memref<1x2048xf32, #tpu.memory_space<vmem>>, vector<1x2048xf32>
    %cst = arith.constant 2.500000e-01 : f32
    %1 = vector.broadcast %cst : f32 to vector<1x2048xf32>
    %2 = arith.mulf %1, %0 : vector<1x2048xf32>
    %3 = math.tanh %2 : vector<1x2048xf32>
    %4 = arith.mulf %0, %3 : vector<1x2048xf32>
    %c0_1 = arith.constant 0 : index
    %c0_2 = arith.constant 0 : index
    %5 = vector.load %arg2[%c0_1, %c0_2] : memref<1x2048xf32, #tpu.memory_space<vmem>>, vector<1x2048xf32>
    tpu.vector_store %arg2[%c0_1, %c0_2], %4 {strides = array<i32>} : memref<1x2048xf32, #tpu.memory_space<vmem>>, vector<1x2048xf32>,
    return
  }
  func.func @transform_0(%arg0: i32) -> (i32, i32) {
    %c0_i32 = arith.constant 0 : i32
    %c0_i32_0 = arith.constant 0 : i32
    return %arg0, %c0_i32 : i32, i32
  }
  func.func @transform_1(%arg0: i32) -> (i32, i32) {
    %c0_i32 = arith.constant 0 : i32
    %c0_i32_0 = arith.constant 0 : i32
    return %arg0, %c0_i32 : i32, i32
  }
}

</mosaic_0001>

<bundles_post_ra>
// kernel: tpu_custom_call.1
= control target key start
LH: loop header
LB: loop body
LE: loop exit
PB: predicated region body
PF: predicated region fallthrough
CT: control target
= control target key end

     0   :  { %6 = vsyncpa [#allocation3], 0  ;;  %s114_s0 = inlined_call_operand.hbm [shape: f32[1,2048], index: 0, kind: input, shape index: {}]   ;;  %s115_s1 = inlined_call_operand.hbm [shape: f32[1,2048], index: 1, kind: output, shape index: {}]  }
   0x1   :  { %7 = vsyncpa [#allocation4], 0  ;;  %s96_s6 = smov [#allocation2]  }
   0x2   :  { %s14_s7 = sshll.u32 %s96_s6, 4  ;;  %s15_s7 = int_to_ptr.vmem [resolvable:$true] %s14_s7 }
   0x3   :  { %s60_s8 = scalar_lea.vmem %s15_s7, 256  ;;  %p65_p1 = scmp.lt.s32.totalorder %s15_s7, %s15_s7 }
   0x4   :  { %p61_p0 = scmp.ne.s32.totalorder %s15_s7, %s60_s8  ;;  %p66_p2 = scmp.lt.s32.totalorder %s60_s8, %s60_s8 }
   0x6   :  { %p67_p3 = por %p66_p2, %p65_p1 }
   0x8   :  { %p68_p4 = pnand %p67_p3, %p61_p0 }
   0xa   :  { %71 = shalt.err (!%p68_p4)
}
   0xb   :  { %17 = dma.hbm_to_vmem [thread:$0]  %s114_s0, 256, %s15_s7, [#allocation3]  }
   0xc   :  { %92 = dma.done.wait [#allocation3], 256  }
   0xd   :  { %93 = vsyncadd [#allocation3], 4294967040  ;;  %v21_v0 = vld [vmem:[#allocation2] sm:$0xff]  ;;  %v22_v1 = vld [vmem:[#allocation2 + $0x8] sm:$0xff]  ;;  %s97_s11 = smov [#allocation5]  }
   0xe   :  { %v23_v2 = vmul.f32 0.25, %v21_v0  ;;  %v24_v3 = vmul.f32 0.25, %v22_v1  ;;  %s37_s12 = sshll.u32 %s97_s11, 4  ;;  %s38_s12 = int_to_ptr.vmem [resolvable:$true] %s37_s12 }
   0xf   :  { %s72_s13 = scalar_lea.vmem %s38_s12, 256  ;;  %p77_p6 = scmp.lt.s32.totalorder %s38_s12, %s38_s12 }
  0x10   :  { %48 = vtanh.f32 %v23_v2  ;;  %p73_p5 = scmp.ne.s32.totalorder %s38_s12, %s72_s13  ;;  %p78_p7 = scmp.lt.s32.totalorder %s72_s13, %s72_s13 }
  0x11   :  { %50 = vtanh.f32 %v24_v3 }
  0x12   :  { %p79_p8 = por %p78_p7, %p77_p6 }
  0x14   :  { %p80_p9 = pnand %p79_p8, %p73_p5 }
  0x1d   :  { %v49_v4 = vpop.eup %48 }
  0x1e   :  { %v51_v5 = vpop.eup %50  ;;  %v27_v6 = vmul.f32 %v49_v4, %v21_v0 }
  0x1f   :  { %v28_v7 = vmul.f32 %v51_v5, %v22_v1 }
  0x20   :  { %29 = vst [vmem:[#allocation5] sm:$0xff] %v27_v6 }
  0x21   :  { %30 = vst [vmem:[#allocation5 + $0x8] sm:$0xff] %v28_v7 }
  0x22   :  { %83 = shalt.err (!%p80_p9)
}
  0x23   :  { %40 = dma.vmem_to_hbm [thread:$0]  %s38_s12, 256, %s115_s1, [#allocation4]  }
  0x24   :  { %94 = dma.done.wait [#allocation4], 256  }
  0x25   :  { %95 = vsyncadd [#allocation4], 4294967040 }
  0x26   :  { %44 = vsyncpa [#allocation3], 1 }
  0x27   :  { %45 = vsyncpa [#allocation4], 1 }

</bundles_post_ra>
